<compile_context>
chip_gen: v7x
topology: tpu7x:2x2x1
jax: 0.10.0
libtpu: 0.0.40
codegen_flags: <defaults>
</compile_context>

<pallas_src>
import functools

import jax
import jax.numpy as jnp
from jax.experimental import pallas as pl
from jax.experimental.pallas import tpu as pltpu

_LANES = 128
_MAX_TILE_ROWS = 1024  # 512 KiB per f32 input block; x2 inputs x2 buffers ~ 2 MiB


def _rmse_kernel(x_ref, y_ref, out_ref, acc_ref, *,
                 n_elems, eps, tile_rows, needs_mask):
    i = pl.program_id(0)

    @pl.when(i == 0)
    def _():
        acc_ref[...] = jnp.zeros_like(acc_ref)

    d = x_ref[...].astype(jnp.float32) - y_ref[...].astype(jnp.float32)
    sq = d * d

    if needs_mask:
        # Mask out lane padding and out-of-bounds rows of the last block.
        row = jax.lax.broadcasted_iota(jnp.int32, (tile_rows, _LANES), 0)
        lane = jax.lax.broadcasted_iota(jnp.int32, (tile_rows, _LANES), 1)
        flat = (i * tile_rows + row) * _LANES + lane
        sq = jnp.where(flat < n_elems, sq, 0.0)

    # Vector accumulator: pure VPU elementwise add each step; the expensive
    # cross-lane reduction happens once at the end.
    acc_ref[...] += sq

    @pl.when(i == pl.num_programs(0) - 1)
    def _():
        mse = jnp.sum(acc_ref[...]) / jnp.float32(n_elems)
        out_ref[0, 0] = jnp.sqrt(mse + jnp.float32(eps))


def rmse_loss(x, y, *, eps=1e-6, max_tile_rows=_MAX_TILE_ROWS):
    assert x.shape == y.shape, "RMSELoss expects x and y of identical shape"
    n_elems = x.size

    # Flatten (no data movement). Keep native dtype; cast inside the kernel.
    xf = x.reshape(-1)
    yf = y.reshape(-1)

    rows = pl.cdiv(n_elems, _LANES)
    padded = rows * _LANES
    if padded != n_elems:
        # Rare ragged case: pad only the (<128-elem) tail so the (rows, 128)
        # view exists. The in-kernel mask makes correctness independent of
        # the pad values.
        xf = jnp.pad(xf, (0, padded - n_elems))
        yf = jnp.pad(yf, (0, padded - n_elems))
    x2 = xf.reshape(rows, _LANES)
    y2 = yf.reshape(rows, _LANES)

    if rows <= max_tile_rows:
        tile_rows = rows          # single grid step: whole slab is one block
        grid_size = 1
    else:
        tile_rows = max_tile_rows  # multiple of 8 -> valid sublane tiling
        grid_size = pl.cdiv(rows, tile_rows)

    needs_mask = (padded != n_elems) or (grid_size * tile_rows != rows)

    kernel = functools.partial(
        _rmse_kernel, n_elems=n_elems, eps=eps,
        tile_rows=tile_rows, needs_mask=needs_mask)

    out = pl.pallas_call(
        kernel,
        out_shape=jax.ShapeDtypeStruct((1, 1), jnp.float32),
        grid_spec=pltpu.PrefetchScalarGridSpec(
            num_scalar_prefetch=0,
            grid=(grid_size,),
            in_specs=[
                pl.BlockSpec((tile_rows, _LANES), lambda i: (i, 0)),
                pl.BlockSpec((tile_rows, _LANES), lambda i: (i, 0)),
            ],
            out_specs=pl.BlockSpec(
                (1, 1), lambda i: (0, 0), memory_space=pltpu.SMEM
            ),
            scratch_shapes=[pltpu.VMEM((tile_rows, _LANES), jnp.float32)],
        ),
        compiler_params=pltpu.CompilerParams(
            # Carried VMEM accumulator -> reduction axis must stay sequential.
            dimension_semantics=("arbitrary",),
        ),
    )(x2, y2)
    return out[0, 0]


if __name__ == "__main__":
    key = jax.random.PRNGKey(0)
    kx, ky = jax.random.split(key)
    # Small NCHW-shaped inputs, consistent with typical use of this loss.
    x = jax.random.normal(kx, (2, 4, 16, 16), dtype=jnp.float32)
    y = jax.random.normal(ky, (2, 4, 16, 16), dtype=jnp.float32)

    loss = jax.block_until_ready(rmse_loss(x, y))

    # Reference check (plain JAX) for sanity.
    ref = jnp.sqrt(jnp.mean((x - y) ** 2) + 1e-6)
    assert jnp.allclose(loss, ref, rtol=1e-5, atol=1e-6), (loss, ref)

    print("KERNEL_OK")
</pallas_src>

<mosaic_0001>
module attributes {stable_mosaic.version = 11 : i64} {
  func.func @_rmse_kernel(%arg0: i32, %arg1: memref<16x128xf32, #tpu.memory_space<vmem>>, %arg2: memref<16x128xf32, #tpu.memory_space<vmem>>, %arg3: memref<1x1xf32, #tpu.memory_space<smem>>, %arg4: memref<16x128xf32, #tpu.memory_space<vmem>>) attributes {dimension_semantics = [#tpu.dimension_semantics<arbitrary>], iteration_bounds = array<i64: 1>, scalar_prefetch = 0 : i64, scratch_operands = 1 : i64, tpu.core_type = #tpu.core_type<tc>, window_params = [{transform_indices = @transform_0, window_bounds = array<i64: 16, 128>}, {transform_indices = @transform_1, window_bounds = array<i64: 16, 128>}, {transform_indices = @transform_2, window_bounds = array<i64: 1, 1>}]} {
    %c0_i32 = arith.constant 0 : i32
    %0 = arith.cmpi eq, %arg0, %c0_i32 : i32
    %1 = arith.extui %0 : i1 to i32
    %c0_i32_0 = arith.constant 0 : i32
    %2 = arith.cmpi ne, %1, %c0_i32_0 : i32
    scf.if %2 {
      %cst = arith.constant 0.000000e+00 : f32
      %13 = vector.broadcast %cst : f32 to vector<16x128xf32>
      %c0_10 = arith.constant 0 : index
      %c0_11 = arith.constant 0 : index
      %14 = vector.load %arg4[%c0_10, %c0_11] : memref<16x128xf32, #tpu.memory_space<vmem>>, vector<16x128xf32>
      tpu.vector_store %arg4[%c0_10, %c0_11], %13 {strides = array<i32>} : memref<16x128xf32, #tpu.memory_space<vmem>>, vector<16x128xf32>,
    } else {
    }
    %c0 = arith.constant 0 : index
    %c0_1 = arith.constant 0 : index
    %3 = vector.load %arg1[%c0, %c0_1] : memref<16x128xf32, #tpu.memory_space<vmem>>, vector<16x128xf32>
    %c0_2 = arith.constant 0 : index
    %c0_3 = arith.constant 0 : index
    %4 = vector.load %arg2[%c0_2, %c0_3] : memref<16x128xf32, #tpu.memory_space<vmem>>, vector<16x128xf32>
    %5 = arith.subf %3, %4 : vector<16x128xf32>
    %6 = arith.mulf %5, %5 : vector<16x128xf32>
    %c0_4 = arith.constant 0 : index
    %c0_5 = arith.constant 0 : index
    %7 = vector.load %arg4[%c0_4, %c0_5] : memref<16x128xf32, #tpu.memory_space<vmem>>, vector<16x128xf32>
    %8 = arith.addf %7, %6 : vector<16x128xf32>
    %c0_6 = arith.constant 0 : index
    %c0_7 = arith.constant 0 : index
    %9 = vector.load %arg4[%c0_6, %c0_7] : memref<16x128xf32, #tpu.memory_space<vmem>>, vector<16x128xf32>
    tpu.vector_store %arg4[%c0_6, %c0_7], %8 {strides = array<i32>} : memref<16x128xf32, #tpu.memory_space<vmem>>, vector<16x128xf32>,
    %c0_i32_8 = arith.constant 0 : i32
    %10 = arith.cmpi eq, %arg0, %c0_i32_8 : i32
    %11 = arith.extui %10 : i1 to i32
    %c0_i32_9 = arith.constant 0 : i32
    %12 = arith.cmpi ne, %11, %c0_i32_9 : i32
    scf.if %12 {
      %c0_10 = arith.constant 0 : index
      %c0_11 = arith.constant 0 : index
      %13 = vector.load %arg4[%c0_10, %c0_11] : memref<16x128xf32, #tpu.memory_space<vmem>>, vector<16x128xf32>
      %14 = vector.shape_cast %13 : vector<16x128xf32> to vector<1x16x128xf32>
      %cst = arith.constant dense<0.000000e+00> : vector<1xf32>
      %15 = vector.multi_reduction <add>, %14, %cst [1, 2] : vector<1x16x128xf32> to vector<1xf32>
      %16 = vector.shape_cast %15 : vector<1xf32> to vector<1x1x1xf32>
      %17 = vector.extract %16[0, 0, 0] : f32 from vector<1x1x1xf32>
      %cst_12 = arith.constant 2.048000e+03 : f32
      %18 = arith.divf %17, %cst_12 : f32
      %cst_13 = arith.constant 9.99999997E-7 : f32
      %19 = arith.addf %18, %cst_13 : f32
      %20 = math.sqrt %19 : f32
      %c0_14 = arith.constant 0 : index
      %c0_15 = arith.constant 0 : index
      %21 = memref.load %arg3[%c0_14, %c0_15] : memref<1x1xf32, #tpu.memory_space<smem>>
      memref.store %20, %arg3[%c0_14, %c0_15] : memref<1x1xf32, #tpu.memory_space<smem>>
    } else {
    }
    return
  }
  func.func @transform_0(%arg0: i32) -> (i32, i32) {
    %c0_i32 = arith.constant 0 : i32
    %c0_i32_0 = arith.constant 0 : i32
    return %arg0, %c0_i32 : i32, i32
  }
  func.func @transform_1(%arg0: i32) -> (i32, i32) {
    %c0_i32 = arith.constant 0 : i32
    %c0_i32_0 = arith.constant 0 : i32
    return %arg0, %c0_i32 : i32, i32
  }
  func.func @transform_2(%arg0: i32) -> (i32, i32) {
    %c0_i32 = arith.constant 0 : i32
    %c0_i32_0 = arith.constant 0 : i32
    %c0_i32_1 = arith.constant 0 : i32
    return %c0_i32, %c0_i32_0 : i32, i32
  }
}

</mosaic_0001>

<bundles_post_ra>
// kernel: tpu_custom_call.1
= control target key start
LH: loop header
LB: loop body
LE: loop exit
PB: predicated region body
PF: predicated region fallthrough
CT: control target
= control target key end

     0   :  { %7 = vsyncpa [#allocation4], 0  ;;  %s232_s0 = inlined_call_operand.hbm [shape: f32[16,128], index: 0, kind: input, shape index: {}]   ;;  %s233_s1 = inlined_call_operand.hbm [shape: f32[16,128], index: 1, kind: input, shape index: {}]   ;;  %s234_s2 = inlined_call_operand.hbm [shape: f32[1,1], index: 2, kind: output, shape index: {}]  }
   0x1   :  { %8 = vsyncpa [#allocation7], 0 }
   0x2   :  { %9 = vsyncpa [#allocation5], 0  ;;  %s176_s9 = smov [#allocation3]   ;;  %s116_s13 = scalar_lea.hbm %s232_s0, 256 }
   0x3   :  { %s15_s10 = sshll.u32 %s176_s9, 4  ;;  %p117_p0 = scmp.ne.s32.totalorder %s232_s0, %s116_s13  ;;  %s16_s10 = int_to_ptr.vmem [resolvable:$true] %s15_s10 }
   0x4   :  { %p120_p1 = scmp.lt.u32.totalorder %s116_s13, %s232_s0 }
   0x6   :  { %p122_p2 = pnand %p120_p1, %p117_p0 }
   0x8   :  { %125 = shalt.err (!%p122_p2)
}
   0x9   :  { %s126_s18 = scalar_lea.vmem %s16_s10, 256  ;;  %p131_p4 = scmp.lt.s32.totalorder %s16_s10, %s16_s10 }
   0xa   :  { %p127_p3 = scmp.ne.s32.totalorder %s16_s10, %s126_s18  ;;  %p132_p5 = scmp.lt.s32.totalorder %s126_s18, %s126_s18 }
   0xc   :  { %p133_p6 = por %p132_p5, %p131_p4 }
   0xe   :  { %p134_p7 = pnand %p133_p6, %p127_p3 }
  0x10   :  { %137 = shalt.err (!%p134_p7)
}
  0x11   :  { %s177_s19 = smov 128   ;;  %s178_s20 = smov 8  }
  0x12   :  { %21 = dma.hbm_to_vmem [thread:$0]  %s232_s0, 256, %s16_s10, [#allocation4], %s177_s19, %s177_s19, %s178_s20  }
  0x13   :  { %s179_s23 = smov [#allocation6]   ;;  %s138_s27 = scalar_lea.hbm %s233_s1, 256 }
  0x14   :  { %s27_s24 = sshll.u32 %s179_s23, 4  ;;  %p139_p8 = scmp.ne.s32.totalorder %s233_s1, %s138_s27  ;;  %s28_s24 = int_to_ptr.vmem [resolvable:$true] %s27_s24 }
  0x15   :  { %p142_p9 = scmp.lt.u32.totalorder %s138_s27, %s233_s1 }
  0x17   :  { %p144_p10 = pnand %p142_p9, %p139_p8 }
  0x19   :  { %147 = shalt.err (!%p144_p10)
}
  0x1a   :  { %s148_s4 = scalar_lea.vmem %s28_s24, 256  ;;  %p153_p12 = scmp.lt.s32.totalorder %s28_s24, %s28_s24 }
  0x1b   :  { %p149_p11 = scmp.ne.s32.totalorder %s28_s24, %s148_s4  ;;  %p154_p13 = scmp.lt.s32.totalorder %s148_s4, %s148_s4 }
  0x1d   :  { %p155_p0 = por %p154_p13, %p153_p12 }
  0x1f   :  { %p156_p1 = pnand %p155_p0, %p149_p11 }
  0x21   :  { %159 = shalt.err (!%p156_p1)
}
  0x22   :  { %33 = dma.hbm_to_vmem [thread:$0]  %s233_s1, 256, %s28_s24, [#allocation7], %s177_s19, %s177_s19, %s178_s20  }
  0x23   :  { %170 = dma.done.wait [#allocation4], 256  }
  0x24   :  { %171 = vsyncadd [#allocation4], 4294967040 }
  0x25   :  { %172 = dma.done.wait [#allocation7], 256  }
  0x26   :  { %173 = vsyncadd [#allocation7], 4294967040  ;;  %v46_v0 = vld [vmem:[#allocation3] sm:$0xff]  ;;  %v47_v1 = vld [vmem:[#allocation3 + $0x8] sm:$0xff]  ;;  %s160_s11 = scalar_lea.hbm %s234_s2, 16 }
  0x27   :  { %v48_v2 = vld [vmem:[#allocation6] sm:$0xff]  ;;  %v49_v3 = vld [vmem:[#allocation6 + $0x8] sm:$0xff]  ;;  %p161_p2 = scmp.ne.s32.totalorder %s234_s2, %s160_s11  ;;  %p164_p3 = scmp.lt.u32.totalorder %s160_s11, %s234_s2 }
  0x28   :  { %v50_v4 = vsub.f32 %v46_v0, %v48_v2  ;;  %v51_v5 = vsub.f32 %v47_v1, %v49_v3 }
  0x29   :  { %p166_p4 = pnand %p164_p3, %p161_p2 }
  0x2a   :  { %v52_v6 = vmul.f32 %v50_v4, %v50_v4  ;;  %v53_v7 = vmul.f32 %v51_v5, %v51_v5 }
  0x2c   :  { %v65_v8 = vadd.f32 %v53_v7, %v52_v6 }
  0x2e   :  { %66 = vadd.xlane.f32.xlu0 %v65_v8 }
  0xbb   :  { %v67_v9 = vpop.xlane.xlu0 %66 }
  0xbc   :  { %v68_v10 = vrot.slane %v67_v9, 4 }
  0xbe   :  { %v69_v11 = vadd.f32 %v68_v10, %v67_v9 }
  0xc0   :  { %v70_v12 = vrot.slane %v69_v11, 2 }
  0xc2   :  { %v71_v13 = vadd.f32 %v70_v12, %v69_v11 }
  0xc4   :  { %v72_v14 = vrot.slane %v71_v13, 1 }
  0xc6   :  { %v73_v15 = vadd.f32 %v72_v14, %v71_v13 }
  0xc8   :  { %105 = vpush %v73_v15 }
  0xf9   :  { %s106_s1 = spop %105 }
  0xfa   :  { %s77_s6 = smul.f32 0.00048828125, %s106_s1 }
  0xfc   :  { %s78_s7 = sadd.f32 1e-06, %s77_s6 }
  0xfe   :  { %v79_v16 = vstv %s78_s7 }
  0xff   :  { %114 = vrsqrt.f32 %v79_v16  ;;  %vm82_vm0 = vcmp.eq.f32.partialorder %v79_v16, inf  ;;  %v85_v19 = vand.u32 2147483648, %v79_v16  ;;  %vm84_vm1 = vcmp.eq.f32.partialorder %v79_v16, 0.0 }
 0x109   :  { %v115_v17 = vpop.eup %114 }
 0x10a   :  { %v81_v18 = vmul.f32 %v115_v17, %v79_v16 }
 0x10c   :  { %v83_v20 = vsel %vm82_vm0, %v79_v16, %v81_v18 }
 0x10d   :  { %v86_v21 = vsel %vm84_vm1, %v85_v19, %v83_v20 }
 0x10e   :  { %107 = vpush %v86_v21 }
 0x13f   :  { %s108_s8 = spop %107 }
 0x140   :  { %89 = sst [smem:[#allocation8]] %s108_s8 }
 0x141   :  { %169 = shalt.err (!%p166_p4)
}
 0x142   :  { %s180_s16 = smov [#allocation8]  }
 0x143   :  { %97 = dma.smem_to_hbm %s180_s16, 16, %s234_s2, [#allocation5]  }
 0x144   :  { %174 = dma.done.wait [#allocation5], 16  }
 0x145   :  { %175 = vsyncadd [#allocation5], 4294967280 }
 0x146   :  { %101 = sfence }
 0x147   :  { %102 = vsyncpa [#allocation4], 1 }
 0x148   :  { %103 = vsyncpa [#allocation7], 1 }
 0x149   :  { %104 = vsyncpa [#allocation5], 1 }

</bundles_post_ra>
